<compile_context>
chip_gen: v6e
topology: v6e:2x2x1
jax: 0.10.0
libtpu: 0.0.40
codegen_flags: <defaults>
</compile_context>

<pallas_src>
import functools

import jax
import jax.numpy as jnp
from jax.experimental import pallas as pl
from jax.experimental.pallas import tpu as pltpu


def _label_smoothing_kernel(pred_ref, tgt_ref, out_ref, acc_ref, *,
                            smoothing, n_classes, total_rows, block_rows,
                            steps_per_core):
    p = pl.program_id(0)          # parallel axis (megacore split)
    s = pl.program_id(1)          # sequential reduction axis over row blocks

    @pl.when(s == 0)
    def _():
        acc_ref[...] = jnp.zeros_like(acc_ref)

    x = pred_ref[...].astype(jnp.float32)            # (tb, C)
    t = tgt_ref[...]                                  # (tb, 1) int32

    # --- log-sum-exp pieces (no full logp / true_dist materialized) --------
    m = jnp.max(x, axis=-1, keepdims=True)            # (tb, 1)
    z = x - m                                          # (tb, C)
    lse = jnp.log(jnp.sum(jnp.exp(z), axis=-1, keepdims=True))   # (tb, 1)
    sum_z = jnp.sum(z, axis=-1, keepdims=True)                    # (tb, 1)

    col = jax.lax.broadcasted_iota(jnp.int32, x.shape, 1)         # (tb, C)
    z_t = jnp.sum(jnp.where(col == t, z, 0.0), axis=-1, keepdims=True)

    confidence = 1.0 - smoothing
    off = smoothing / (n_classes - 1)
    # sum_c(true_dist * logp) = off*(sum_z - C*lse) + (conf - off)*(z_t - lse)
    row_loss = -(off * (sum_z - n_classes * lse)
                 + (confidence - off) * (z_t - lse))              # (tb, 1)

    # --- mask rows past the true batch (partial last block) ----------------
    row_start = (p * steps_per_core + s) * block_rows
    row_idx = row_start + jax.lax.broadcasted_iota(jnp.int32, (block_rows, 1), 0)
    row_loss = jnp.where(row_idx < total_rows, row_loss, 0.0)

    acc_ref[...] += row_loss

    @pl.when(s == pl.num_programs(1) - 1)
    def _():
        out_ref[0, 0] = jnp.sum(acc_ref[...])


def _vmem_limit_bytes():
    # Generation-aware scoped-VMEM limit: ~75% of physical, capped at 100 MiB.
    try:
        cap = int(pltpu.get_tpu_info().vmem_capacity_bytes)
    except Exception:
        cap = 64 << 20            # v7x-safe fallback
    return min(int(0.75 * cap), 100 << 20)


def _pick_block_rows(n_rows, n_classes, itemsize, vmem_limit):
    # pred tile is double-buffered; keep ~50% headroom for tgt/scratch/etc.
    budget = vmem_limit // 2
    tb = budget // (2 * n_classes * max(1, itemsize))
    tb = max(8, min(int(tb), 4096))
    tb = (tb // 8) * 8
    padded_rows = ((n_rows + 7) // 8) * 8
    tb = min(tb, padded_rows)

    # Prefer an even block count so the batch can split across two TCs (v7x).
    n_blocks = pl.cdiv(n_rows, tb)
    if n_blocks > 1 and n_blocks % 2 == 1:
        alt = max(8, ((pl.cdiv(n_rows, n_blocks + 1) + 7) // 8) * 8)
        if pl.cdiv(n_rows, alt) % 2 == 0:
            tb = alt
    return tb


def label_smoothing_loss(pred, target, *, classes, smoothing=0.0,
                         block_rows=None):
    """pred: (B, C) float logits (f32 or bf16), target: (B,) int -> f32 scalar."""
    B, C = pred.shape
    assert C == classes

    tgt2d = target.astype(jnp.int32).reshape(B, 1)

    vmem_limit = _vmem_limit_bytes()
    if block_rows is None:
        block_rows = _pick_block_rows(B, C, jnp.dtype(pred.dtype).itemsize,
                                      vmem_limit)
    assert block_rows % 8 == 0, "block_rows must be a multiple of 8"

    n_blocks = pl.cdiv(B, block_rows)
    # Megacore split: two parallel streams when the block count permits.
    if n_blocks >= 2 and n_blocks % 2 == 0:
        n_par, n_steps = 2, n_blocks // 2
    else:
        n_par, n_steps = 1, n_blocks

    kernel = functools.partial(
        _label_smoothing_kernel,
        smoothing=float(smoothing),
        n_classes=int(classes),
        total_rows=int(B),
        block_rows=int(block_rows),
        steps_per_core=int(n_steps),
    )

    partial_sums = pl.pallas_call(
        kernel,
        out_shape=jax.ShapeDtypeStruct((n_par, 1), jnp.float32),
        grid_spec=pltpu.PrefetchScalarGridSpec(
            num_scalar_prefetch=0,
            grid=(n_par, n_steps),
            in_specs=[
                pl.BlockSpec((block_rows, C), lambda p, s: (p * n_steps + s, 0)),
                pl.BlockSpec((block_rows, 1), lambda p, s: (p * n_steps + s, 0)),
            ],
            out_specs=pl.BlockSpec((1, 1), lambda p, s: (p, 0),
                                   memory_space=pltpu.SMEM),
            scratch_shapes=[pltpu.VMEM((block_rows, 1), jnp.float32)],
        ),
        compiler_params=pltpu.CompilerParams(
            dimension_semantics=("parallel", "arbitrary"),
            vmem_limit_bytes=vmem_limit,
        ),
    )(pred, tgt2d)

    return jnp.sum(partial_sums) / jnp.float32(B)


def _reference(pred, target, classes, smoothing):
    # pure-JAX reference mirroring the PyTorch forward
    logp = jax.nn.log_softmax(pred.astype(jnp.float32), axis=-1)
    confidence = 1.0 - smoothing
    off = smoothing / (classes - 1)
    true_dist = jnp.full_like(logp, off)
    true_dist = true_dist.at[jnp.arange(pred.shape[0]), target].set(confidence)
    return jnp.mean(jnp.sum(-true_dist * logp, axis=-1))


if __name__ == "__main__":
    key = jax.random.PRNGKey(0)
    smoothing = 0.1

    # Case 1: small, exact-fit shapes (auto-picked tile covers the batch).
    B, C = 16, 128
    kp, kt, key = (*jax.random.split(key, 2), key)
    kp, kt = jax.random.split(jax.random.PRNGKey(0))
    pred = jax.random.normal(kp, (B, C), dtype=jnp.float32)
    target = jax.random.randint(kt, (B,), 0, C, dtype=jnp.int32)
    loss = jax.block_until_ready(
        label_smoothing_loss(pred, target, classes=C, smoothing=smoothing))
    ref = _reference(pred, target, C, smoothing)
    assert jnp.allclose(loss, ref, rtol=1e-5, atol=2e-5), (loss, ref)

    # Case 2: ragged batch + multi-step accumulation (remainder mask path).
    B2 = 100
    kp2, kt2 = jax.random.split(jax.random.PRNGKey(1))
    pred2 = jax.random.normal(kp2, (B2, C), dtype=jnp.float32)
    target2 = jax.random.randint(kt2, (B2,), 0, C, dtype=jnp.int32)
    loss2 = jax.block_until_ready(
        label_smoothing_loss(pred2, target2, classes=C, smoothing=smoothing,
                             block_rows=16))
    ref2 = _reference(pred2, target2, C, smoothing)
    assert jnp.allclose(loss2, ref2, rtol=1e-5, atol=2e-5), (loss2, ref2)

    # Case 3: even block count -> 2-way parallel (megacore) grid path.
    B3 = 64
    kp3, kt3 = jax.random.split(jax.random.PRNGKey(2))
    pred3 = jax.random.normal(kp3, (B3, C), dtype=jnp.float32)
    target3 = jax.random.randint(kt3, (B3,), 0, C, dtype=jnp.int32)
    loss3 = jax.block_until_ready(
        label_smoothing_loss(pred3, target3, classes=C, smoothing=smoothing,
                             block_rows=16))
    ref3 = _reference(pred3, target3, C, smoothing)
    assert jnp.allclose(loss3, ref3, rtol=1e-5, atol=2e-5), (loss3, ref3)

    print("KERNEL_OK")
</pallas_src>

<mosaic_0001>
module attributes {stable_mosaic.version = 11 : i64} {
  func.func @_label_smoothing_kernel(%arg0: i32, %arg1: i32, %arg2: memref<16x128xf32, #tpu.memory_space<vmem>>, %arg3: memref<16x1xi32, #tpu.memory_space<vmem>>, %arg4: memref<1x1xf32, #tpu.memory_space<smem>>, %arg5: memref<16x1xf32, #tpu.memory_space<vmem>>) attributes {dimension_semantics = [#tpu.dimension_semantics<parallel>, #tpu.dimension_semantics<arbitrary>], iteration_bounds = array<i64: 1, 1>, scalar_prefetch = 0 : i64, scratch_operands = 1 : i64, tpu.core_type = #tpu.core_type<tc>, window_params = [{transform_indices = @transform_0, window_bounds = array<i64: 16, 128>}, {transform_indices = @transform_1, window_bounds = array<i64: 16, 1>}, {transform_indices = @transform_2, window_bounds = array<i64: 1, 1>}]} {
    %c0_i32 = arith.constant 0 : i32
    %0 = arith.cmpi eq, %arg1, %c0_i32 : i32
    %1 = arith.extui %0 : i1 to i32
    %c0_i32_0 = arith.constant 0 : i32
    %2 = arith.cmpi ne, %1, %c0_i32_0 : i32
    scf.if %2 {
      %cst_20 = arith.constant 0.000000e+00 : f32
      %49 = vector.broadcast %cst_20 : f32 to vector<16x1xf32>
      %c0_21 = arith.constant 0 : index
      %c0_22 = arith.constant 0 : index
      %50 = vector.load %arg5[%c0_21, %c0_22] : memref<16x1xf32, #tpu.memory_space<vmem>>, vector<16x1xf32>
      tpu.vector_store %arg5[%c0_21, %c0_22], %49 {strides = array<i32>} : memref<16x1xf32, #tpu.memory_space<vmem>>, vector<16x1xf32>,
    } else {
    }
    %c0 = arith.constant 0 : index
    %c0_1 = arith.constant 0 : index
    %3 = vector.load %arg2[%c0, %c0_1] : memref<16x128xf32, #tpu.memory_space<vmem>>, vector<16x128xf32>
    %c0_2 = arith.constant 0 : index
    %c0_3 = arith.constant 0 : index
    %4 = vector.load %arg3[%c0_2, %c0_3] : memref<16x1xi32, #tpu.memory_space<vmem>>, vector<16x1xi32>
    %cst = arith.constant dense<0xFF800000> : vector<16xf32>
    %5 = vector.multi_reduction <maximumf>, %3, %cst [1] : vector<16x128xf32> to vector<16xf32>
    %6 = vector.shape_cast %5 : vector<16xf32> to vector<16x1xf32>
    %7 = vector.broadcast %6 : vector<16x1xf32> to vector<16x128xf32>
    %8 = arith.subf %3, %7 : vector<16x128xf32>
    %9 = math.exp %8 : vector<16x128xf32>
    %cst_4 = arith.constant dense<0.000000e+00> : vector<16xf32>
    %10 = vector.multi_reduction <add>, %9, %cst_4 [1] : vector<16x128xf32> to vector<16xf32>
    %11 = vector.shape_cast %10 : vector<16xf32> to vector<16x1xf32>
    %12 = math.log %11 : vector<16x1xf32>
    %cst_5 = arith.constant dense<0.000000e+00> : vector<16xf32>
    %13 = vector.multi_reduction <add>, %8, %cst_5 [1] : vector<16x128xf32> to vector<16xf32>
    %14 = vector.shape_cast %13 : vector<16xf32> to vector<16x1xf32>
    %15 = tpu.iota {dimensions = array<i32: 1>} : vector<16x128xi32>
    %16 = vector.broadcast %4 : vector<16x1xi32> to vector<16x128xi32>
    %17 = arith.cmpi eq, %15, %16 : vector<16x128xi32>
    %cst_6 = arith.constant 0.000000e+00 : f32
    %18 = vector.broadcast %cst_6 : f32 to vector<16x128xf32>
    %19 = arith.select %17, %8, %18 : vector<16x128xi1>, vector<16x128xf32>
    %cst_7 = arith.constant dense<0.000000e+00> : vector<16xf32>
    %20 = vector.multi_reduction <add>, %19, %cst_7 [1] : vector<16x128xf32> to vector<16xf32>
    %21 = vector.shape_cast %20 : vector<16xf32> to vector<16x1xf32>
    %cst_8 = arith.constant 1.280000e+02 : f32
    %22 = vector.broadcast %cst_8 : f32 to vector<16x1xf32>
    %23 = arith.mulf %22, %12 : vector<16x1xf32>
    %24 = arith.subf %14, %23 : vector<16x1xf32>
    %cst_9 = arith.constant 7.87401571E-4 : f32
    %25 = vector.broadcast %cst_9 : f32 to vector<16x1xf32>
    %26 = arith.mulf %25, %24 : vector<16x1xf32>
    %27 = arith.subf %21, %12 : vector<16x1xf32>
    %cst_10 = arith.constant 0.899212599 : f32
    %28 = vector.broadcast %cst_10 : f32 to vector<16x1xf32>
    %29 = arith.mulf %28, %27 : vector<16x1xf32>
    %30 = arith.addf %26, %29 : vector<16x1xf32>
    %cst_11 = arith.constant 0.000000e+00 : f32
    %31 = vector.broadcast %cst_11 : f32 to vector<16x1xf32>
    %32 = arith.subf %31, %30 : vector<16x1xf32>
    %c1_i32 = arith.constant 1 : i32
    %33 = arith.muli %arg0, %c1_i32 : i32
    %34 = arith.addi %33, %arg1 : i32
    %c16_i32 = arith.constant 16 : i32
    %35 = arith.muli %34, %c16_i32 : i32
    %36 = tpu.iota {dimensions = array<i32: 0>} : vector<16x1xi32>
    %37 = vector.broadcast %35 : i32 to vector<16x1xi32>
    %38 = arith.addi %37, %36 : vector<16x1xi32>
    %c16_i32_12 = arith.constant 16 : i32
    %39 = vector.broadcast %c16_i32_12 : i32 to vector<16x1xi32>
    %40 = arith.cmpi slt, %38, %39 : vector<16x1xi32>
    %cst_13 = arith.constant 0.000000e+00 : f32
    %41 = vector.broadcast %cst_13 : f32 to vector<16x1xf32>
    %42 = arith.select %40, %32, %41 : vector<16x1xi1>, vector<16x1xf32>
    %c0_14 = arith.constant 0 : index
    %c0_15 = arith.constant 0 : index
    %43 = vector.load %arg5[%c0_14, %c0_15] : memref<16x1xf32, #tpu.memory_space<vmem>>, vector<16x1xf32>
    %44 = arith.addf %43, %42 : vector<16x1xf32>
    %c0_16 = arith.constant 0 : index
    %c0_17 = arith.constant 0 : index
    %45 = vector.load %arg5[%c0_16, %c0_17] : memref<16x1xf32, #tpu.memory_space<vmem>>, vector<16x1xf32>
    tpu.vector_store %arg5[%c0_16, %c0_17], %44 {strides = array<i32>} : memref<16x1xf32, #tpu.memory_space<vmem>>, vector<16x1xf32>,
    %c0_i32_18 = arith.constant 0 : i32
    %46 = arith.cmpi eq, %arg1, %c0_i32_18 : i32
    %47 = arith.extui %46 : i1 to i32
    %c0_i32_19 = arith.constant 0 : i32
    %48 = arith.cmpi ne, %47, %c0_i32_19 : i32
    scf.if %48 {
      %c0_20 = arith.constant 0 : index
      %c0_21 = arith.constant 0 : index
      %49 = vector.load %arg5[%c0_20, %c0_21] : memref<16x1xf32, #tpu.memory_space<vmem>>, vector<16x1xf32>
      %50 = vector.shape_cast %49 : vector<16x1xf32> to vector<1x16x1xf32>
      %cst_22 = arith.constant dense<0.000000e+00> : vector<1xf32>
      %51 = vector.multi_reduction <add>, %50, %cst_22 [1, 2] : vector<1x16x1xf32> to vector<1xf32>
      %52 = vector.shape_cast %51 : vector<1xf32> to vector<1x1x1xf32>
      %53 = vector.extract %52[0, 0, 0] : f32 from vector<1x1x1xf32>
      %c0_23 = arith.constant 0 : index
      %c0_24 = arith.constant 0 : index
      %54 = memref.load %arg4[%c0_23, %c0_24] : memref<1x1xf32, #tpu.memory_space<smem>>
      memref.store %53, %arg4[%c0_23, %c0_24] : memref<1x1xf32, #tpu.memory_space<smem>>
    } else {
    }
    return
  }
  func.func @transform_0(%arg0: i32, %arg1: i32) -> (i32, i32) {
    %c1_i32 = arith.constant 1 : i32
    %0 = arith.muli %arg0, %c1_i32 : i32
    %1 = arith.addi %0, %arg1 : i32
    %c0_i32 = arith.constant 0 : i32
    %c0_i32_0 = arith.constant 0 : i32
    return %1, %c0_i32 : i32, i32
  }
  func.func @transform_1(%arg0: i32, %arg1: i32) -> (i32, i32) {
    %c1_i32 = arith.constant 1 : i32
    %0 = arith.muli %arg0, %c1_i32 : i32
    %1 = arith.addi %0, %arg1 : i32
    %c0_i32 = arith.constant 0 : i32
    %c0_i32_0 = arith.constant 0 : i32
    return %1, %c0_i32 : i32, i32
  }
  func.func @transform_2(%arg0: i32, %arg1: i32) -> (i32, i32) {
    %c0_i32 = arith.constant 0 : i32
    %c0_i32_0 = arith.constant 0 : i32
    return %arg0, %c0_i32 : i32, i32
  }
}

</mosaic_0001>

<bundles_post_ra>
// kernel: tpu_custom_call.1
= control target key start
LH: loop header
LB: loop body
LE: loop exit
PB: predicated region body
PF: predicated region fallthrough
CT: control target
= control target key end

     0   :  { %v207_v2 = vmov 0   ;;  %s246_s0 = inlined_call_operand.vmem [shape: f32[16,128], index: 0, kind: input, shape index: {}]   ;;  %s247_s1 = inlined_call_operand.vmem [shape: s32[16,1], index: 1, kind: input, shape index: {}]   ;;  %s248_s2 = inlined_call_operand.hbm [shape: f32[1,1], index: 2, kind: output, shape index: {}]  }
   0x1   :  { %v63_v0 = vld [vmem:[%s246_s0] sm:$0xff]  ;;  %187 = vset.pattern.permute.xlu1 %v207_v2 }
   0x2   :  { %v65_v1 = vld [vmem:[%s247_s1] sm:$0xff]  ;;  %67 = vmax.xlane.f32.xlu0 %v63_v0 }
   0x3   :  { %7 = vsyncpa [#allocation4], 0  ;;  %v64_v3 = vld [vmem:[%s246_s0 + $0x8] sm:$0xff]  ;;  %92 = vperm.xlu1 %187, %v65_v1   ;;  %188 = vset.pattern.permute.xlu0 %v207_v2  ;;  %v89_v12 = vlaneseq  ;;  %vm60_vm2 = vcmask 7168   ;;  %v208_v19 = vmov 0.0  }
   0x4   :  { %v66_v4 = vld [vmem:[%s247_s1 + $0x8] sm:$0xff]  ;;  %61 = vst.msk [vmem:[#allocation2] sm:$0xff] %vm60_vm2, %v208_v19  ;;  %62 = vst.msk [vmem:[#allocation2 + $0x8] sm:$0xff] %vm60_vm2, %v208_v19  ;;  %s209_s1 = smov [#allocation3]  }
   0x5   :  { %v90_v15 = vand.u32 127, %v89_v12 }
   0x6   :  { %69 = vmax.xlane.f32.xlu0 %v64_v3 }
   0x7   :  { %95 = vperm.xlu1 %187, %v66_v4  }
   0xb   :  { %v131_v39 = vld [vmem:[#allocation2] sm:$0xff]  ;;  %v132_v45 = vld [vmem:[#allocation2 + $0x8] sm:$0xff] }
  0x7e   :  { %v93_v14 = vpop.permute.xlu1 %92 }
  0x7f   :  { %vm97_vm0 = vcmp.eq.s32.totalorder %v90_v15, %v93_v14 }
  0x82   :  { %v96_v16 = vpop.permute.xlu1 %95 }
  0x83   :  { %vm98_vm1 = vcmp.eq.s32.totalorder %v90_v15, %v96_v16 }
  0x8b   :  { %v68_v5 = vpop.xlane.xlu0 %67 }
  0x8c   :  { %v71_v6 = vsub.f32 %v63_v0, %v68_v5 }
  0x8e   :  { %v73_v7 = vmul.f32 1.442695, %v71_v6  ;;  %v99_v17 = vsel %vm97_vm0, %v71_v6, 0.0 }
  0x8f   :  { %v70_v8 = vpop.xlane.xlu0 %69 }
  0x90   :  { %189 = vpow2.f32 %v73_v7  ;;  %v72_v9 = vsub.f32 %v64_v3, %v70_v8 }
  0x92   :  { %v75_v10 = vmul.f32 1.442695, %v72_v9  ;;  %v100_v18 = vsel %vm98_vm1, %v72_v9, 0.0 }
  0x94   :  { %191 = vpow2.f32 %v75_v10 }
  0x9d   :  { %v190_v11 = vpop.eup %189 }
  0x9e   :  { %77 = vadd.xlane.f32.xlu0 %v190_v11 }
  0xa1   :  { %v192_v13 = vpop.eup %191 }
  0xa2   :  { %85 = vadd.xlane.f32.xlu0 %v71_v6  ;;  %79 = vadd.xlane.f32.xlu1 %v192_v13 }
  0xa6   :  { %87 = vadd.xlane.f32.xlu0 %v72_v9 }
  0xaa   :  { %101 = vadd.xlane.f32.xlu0 %v99_v17 }
  0xae   :  { %103 = vadd.xlane.f32.xlu0 %v100_v18 }
 0x127   :  { %v78_v20 = vpop.xlane.xlu0 %77 }
 0x128   :  { %193 = vlog2.f32 %v78_v20 }
 0x12b   :  { %v80_v21 = vpop.xlane.xlu1 %79  ;;  %v86_v22 = vpop.xlane.xlu0 %85 }
 0x12c   :  { %195 = vlog2.f32 %v80_v21 }
 0x12f   :  { %v88_v23 = vpop.xlane.xlu0 %87 }
 0x133   :  { %v102_v25 = vpop.xlane.xlu0 %101 }
 0x135   :  { %v194_v24 = vpop.eup %193 }
 0x136   :  { %v82_v26 = vmul.f32 0.6931472, %v194_v24 }
 0x137   :  { %v104_v32 = vpop.xlane.xlu0 %103 }
 0x138   :  { %v105_v27 = vmul.f32 128.0, %v82_v26  ;;  %v111_v28 = vsub.f32 %v102_v25, %v82_v26 }
 0x139   :  { %v196_v29 = vpop.eup %195 }
 0x13a   :  { %v84_v30 = vmul.f32 0.6931472, %v196_v29  ;;  %v107_v31 = vsub.f32 %v86_v22, %v105_v27  ;;  %v113_v35 = vmul.f32 0.8992126, %v111_v28 }
 0x13c   :  { %v109_v33 = vmul.f32 0.0007874016, %v107_v31  ;;  %v106_v34 = vmul.f32 128.0, %v84_v30  ;;  %v112_v36 = vsub.f32 %v104_v32, %v84_v30 }
 0x13e   :  { %v108_v37 = vsub.f32 %v88_v23, %v106_v34  ;;  %v115_v38 = vadd.f32 %v113_v35, %v109_v33  ;;  %v114_v42 = vmul.f32 0.8992126, %v112_v36 }
 0x140   :  { %v110_v40 = vmul.f32 0.0007874016, %v108_v37  ;;  %v117_v41 = vsub.f32 0.0, %v115_v38 }
 0x142   :  { %v133_v43 = vadd.f32 %v131_v39, %v117_v41  ;;  %v116_v44 = vadd.f32 %v114_v42, %v110_v40 }
 0x144   :  { %136 = vst.msk [vmem:[#allocation2] sm:$0xff] %vm60_vm2, %v133_v43  ;;  %v118_v46 = vsub.f32 0.0, %v116_v44 }
 0x146   :  { %v134_v47 = vadd.f32 %v132_v45, %v118_v46 }
 0x148   :  { %137 = vst.msk [vmem:[#allocation2 + $0x8] sm:$0xff] %vm60_vm2, %v134_v47 }
 0x14b   :  { %v141_v48 = vld [vmem:[#allocation2] sm:$0xff] }
 0x14c   :  { %v143_v50 = vsel %vm60_vm2, %v141_v48, 0.0 }
 0x14f   :  { %v142_v49 = vld [vmem:[#allocation2 + $0x8] sm:$0xff] }
 0x150   :  { %v144_v51 = vsel %vm60_vm2, %v142_v49, 0.0 }
 0x151   :  { %v145_v52 = vadd.f32 %v144_v51, %v143_v50 }
 0x153   :  { %146 = vadd.xlane.f32.xlu0 %v145_v52 }
 0x1dc   :  { %v147_v53 = vpop.xlane.xlu0 %146 }
 0x1dd   :  { %v148_v54 = vrot.slane %v147_v53, 4 }
 0x1df   :  { %v149_v55 = vadd.f32 %v148_v54, %v147_v53 }
 0x1e1   :  { %v150_v56 = vrot.slane %v149_v55, 2 }
 0x1e3   :  { %v151_v57 = vadd.f32 %v150_v56, %v149_v55 }
 0x1e5   :  { %v152_v58 = vrot.slane %v151_v57, 1 }
 0x1e7   :  { %v153_v59 = vadd.f32 %v152_v58, %v151_v57 }
 0x1e9   :  { %182 = vpush %v153_v59 }
 0x21a   :  { %s183_s0 = spop %182 }
 0x21b   :  { %156 = sst [smem:[#allocation3]] %s183_s0 }
 0x21c   :  { %164 = dma.smem_to_hbm %s209_s1, 16, %s248_s2, [#allocation4]  }
 0x21d   :  { %205 = dma.done.wait [#allocation4], 16  }
 0x21e   :  { %206 = vsyncadd [#allocation4], 4294967280 }
 0x21f   :  { %168 = sfence }
 0x220   :  { %169 = vsyncpa [#allocation4], 1 }

</bundles_post_ra>
